<compile_context>
chip_gen: v7x
topology: tpu7x:2x2x1
jax: 0.10.0
libtpu: 0.0.40
codegen_flags: <defaults>
</compile_context>

<pallas_src>
import numpy as np
import jax
import jax.numpy as jnp
from jax.experimental import pallas as pl
from jax.experimental.pallas import tpu as pltpu


# --------------------------------------------------------------------------------------
# Kernel
# --------------------------------------------------------------------------------------
def _mlp_ln_kernel(x_ref, w1_ref, w2_ref, w3_ref, pb_ref, o_ref):
    """Fused Linear->SiLU->Linear->SiLU->Linear->LayerNorm on one row tile.

    pb_ref packs [b1; b2; b3; gamma; beta] as rows 0..4 of an (8, W) f32 block.
    """
    hidden = w1_ref.shape[1]
    out_size = w3_ref.shape[1]

    pb = pb_ref[...]                       # (8, W) f32, one small load
    b1 = pb[0:1, :hidden]
    b2 = pb[1:2, :hidden]
    b3 = pb[2:3, :out_size]
    gamma = pb[3:4, :out_size]
    beta = pb[4:5, :out_size]

    x = x_ref[...]

    # Matmuls run in the weights' (bf16) dtype with f32 accumulation on the MXU.
    h = jnp.dot(x.astype(w1_ref.dtype), w1_ref[...],
                preferred_element_type=jnp.float32) + b1
    h = h * jax.nn.sigmoid(h)              # SiLU, f32 (EUP sigmoid + VPU mul)

    h = jnp.dot(h.astype(w2_ref.dtype), w2_ref[...],
                preferred_element_type=jnp.float32) + b2
    h = h * jax.nn.sigmoid(h)              # SiLU

    y = jnp.dot(h.astype(w3_ref.dtype), w3_ref[...],
                preferred_element_type=jnp.float32) + b3

    # LayerNorm over last dim (biased variance, torch default eps=1e-5), all f32.
    mu = jnp.mean(y, axis=-1, keepdims=True)
    var = jnp.mean((y - mu) * (y - mu), axis=-1, keepdims=True)
    y_hat = (y - mu) * jax.lax.rsqrt(var + 1e-5)
    o_ref[...] = (y_hat * gamma + beta).astype(o_ref.dtype)


# --------------------------------------------------------------------------------------
# Host-side helpers
# --------------------------------------------------------------------------------------
def _round_up(x, m):
    return ((x + m - 1) // m) * m


def _ceil_div(a, b):
    return -(-a // b)


def _num_tensorcores():
    """Best-effort TensorCores-per-chip query (v7x: 2, v5e/v6e: 1). Falls back to 1."""
    try:
        info = pltpu.get_tpu_info()
        for name in ("num_cores", "num_cores_per_chip", "core_count", "num_tensorcores"):
            v = getattr(info, name, None)
            if isinstance(v, int) and v > 0:
                return v
    except Exception:
        pass
    try:
        d = jax.devices()[0]
        for name in ("num_cores", "core_count"):
            v = getattr(d, name, None)
            if isinstance(v, int) and v > 0:
                return v
    except Exception:
        pass
    return 1


def _pick_tile(n_rows, tile_rows, n_cores):
    """Row tile: multiple of 8, <= tile_rows, <= rows rounded up to 8.

    On multi-TensorCore chips (v7x) prefer an even grid-step count so both cores get
    balanced work; on single-core v5e/v6e never split small inputs (pure overhead).
    """
    n8 = _round_up(max(int(n_rows), 1), 8)
    tile = max(8, min(_round_up(int(tile_rows), 8), n8))
    if n_cores >= 2 and n8 >= 16:
        steps = _ceil_div(n8, tile)
        if steps % 2 == 1:
            cand = _round_up(_ceil_div(n8, steps + 1), 8)
            if cand >= 8 and _ceil_div(n8, cand) % 2 == 0:
                tile = cand
    return tile


def _derive_vmem_limit(tile, in_size, hidden, out_size, in_bytes, out_bytes, param_bytes):
    """VMEM limit from actual buffer sizes (double-buffered I/O tiles + resident params
    + f32 intermediate slack), clamped to [16 MiB, 64 MiB] (64 MiB = v7x physical VMEM)."""
    io = 2 * tile * in_size * in_bytes + 2 * tile * out_size * out_bytes
    resident = 2 * param_bytes
    scratch = 6 * tile * max(hidden, out_size) * 4
    limit = io + resident + scratch + (4 << 20)
    return int(min(max(limit, 16 << 20), 64 << 20))


def mlp_layernorm(x, params, *, tile_rows=1024, out_dtype=jnp.bfloat16):
    """Apply the fused MLP+LayerNorm kernel over all rows of x (any row count, no pad/slice)."""
    w1, w2, w3, packed = params
    n_rows, in_size = x.shape
    hidden = w1.shape[1]
    out_size = w3.shape[1]

    tile = _pick_tile(n_rows, tile_rows, _num_tensorcores())
    grid = (pl.cdiv(n_rows, tile),)        # ragged last block is masked by Pallas

    full = lambda i: (0, 0)                # weights / packed params: VMEM-resident
    row = lambda i: (i, 0)                 # rows tiled along grid axis 0

    in_bytes = np.dtype(x.dtype).itemsize
    out_bytes = np.dtype(out_dtype).itemsize
    param_bytes = sum(int(a.size) * np.dtype(a.dtype).itemsize for a in (w1, w2, w3, packed))

    cost = pl.CostEstimate(
        flops=2 * n_rows * (in_size * hidden + hidden * hidden + hidden * out_size),
        transcendentals=2 * n_rows * hidden,     # the two SiLU sigmoids
        bytes_accessed=n_rows * (in_size * in_bytes + out_size * out_bytes) + param_bytes,
    )

    return pl.pallas_call(
        _mlp_ln_kernel,
        out_shape=jax.ShapeDtypeStruct((n_rows, out_size), out_dtype),
        grid=grid,
        in_specs=[
            pl.BlockSpec((tile, in_size), row),
            pl.BlockSpec((in_size, hidden), full),
            pl.BlockSpec((hidden, hidden), full),
            pl.BlockSpec((hidden, out_size), full),
            pl.BlockSpec(packed.shape, full),
        ],
        out_specs=pl.BlockSpec((tile, out_size), row),
        compiler_params=pltpu.CompilerParams(
            dimension_semantics=("parallel",),
            vmem_limit_bytes=_derive_vmem_limit(
                tile, in_size, hidden, out_size, in_bytes, out_bytes, param_bytes)),
        cost_estimate=cost,
    )(x, w1, w2, w3, packed)


def init_mlp_params(key, in_size, hidden_size, out_size, *, matmul_dtype=jnp.bfloat16):
    """Synthetic init for build_mlp(..., drop_out=False, lay_norm=True).

    Weights stored in `matmul_dtype` (bf16) for MXU-peak matmuls with f32 accumulation;
    biases + LayerNorm params stay f32, packed into one (8, W) block.
    """
    ks = jax.random.split(key, 6)

    def lin(kw, kb, fan_in, fan_out):
        bound = 1.0 / float(fan_in) ** 0.5
        w = jax.random.uniform(kw, (fan_in, fan_out), jnp.float32, -bound, bound)
        b = jax.random.uniform(kb, (fan_out,), jnp.float32, -bound, bound)
        return w.astype(matmul_dtype), b

    w1, b1 = lin(ks[0], ks[1], in_size, hidden_size)
    w2, b2 = lin(ks[2], ks[3], hidden_size, hidden_size)
    w3, b3 = lin(ks[4], ks[5], hidden_size, out_size)
    gamma = jnp.ones((out_size,), jnp.float32)
    beta = jnp.zeros((out_size,), jnp.float32)

    width = max(hidden_size, out_size)
    packed = jnp.zeros((8, width), jnp.float32)
    packed = packed.at[0, :hidden_size].set(b1)
    packed = packed.at[1, :hidden_size].set(b2)
    packed = packed.at[2, :out_size].set(b3)
    packed = packed.at[3, :out_size].set(gamma)
    packed = packed.at[4, :out_size].set(beta)
    return (w1, w2, w3, packed)


class EncoderPallas:
    """JAX/Pallas port of Encoder: nb_encoder(node_attr), eb_encoder(edge_attr)."""

    def __init__(self, key, node_input_size, edge_input_size, hidden_size,
                 *, tile_rows=1024, out_dtype=jnp.bfloat16):
        k_nb, k_eb = jax.random.split(key)
        self.nb_params = init_mlp_params(k_nb, node_input_size, hidden_size, hidden_size)
        self.eb_params = init_mlp_params(k_eb, edge_input_size, hidden_size, hidden_size)
        self.tile_rows = tile_rows
        self.out_dtype = out_dtype
        self.scale = jnp.sqrt(jnp.float32(hidden_size))   # kept for parity (unused)

    def __call__(self, node_attr, edge_attr, edge_index, face):
        node_ = mlp_layernorm(node_attr, self.nb_params,
                              tile_rows=self.tile_rows, out_dtype=self.out_dtype)
        edge_ = mlp_layernorm(edge_attr, self.eb_params,
                              tile_rows=self.tile_rows, out_dtype=self.out_dtype)
        graph_out = {
            "x": node_,
            "edge_attr": edge_,
            "edge_index": edge_index,   # passthrough, no compute
            "face": face,               # passthrough, no compute
        }
        return graph_out, edge_, node_


# --------------------------------------------------------------------------------------
# Pure-JAX reference (same bf16-matmul / f32-accumulate recipe) for correctness
# --------------------------------------------------------------------------------------
def _silu(x):
    return x * jax.nn.sigmoid(x)


def _mlp_ln_ref(x, params):
    w1, w2, w3, packed = params
    hidden = w1.shape[1]
    out_size = w3.shape[1]
    b1 = packed[0, :hidden]
    b2 = packed[1, :hidden]
    b3 = packed[2, :out_size]
    gamma = packed[3, :out_size]
    beta = packed[4, :out_size]

    def lin(a, w, b):
        return jnp.dot(a.astype(w.dtype), w, preferred_element_type=jnp.float32) + b

    h = _silu(lin(x, w1, b1))
    h = _silu(lin(h, w2, b2))
    y = lin(h, w3, b3)
    mu = y.mean(-1, keepdims=True)
    var = ((y - mu) ** 2).mean(-1, keepdims=True)
    return (y - mu) / jnp.sqrt(var + 1e-5) * gamma + beta


if __name__ == "__main__":
    key = jax.random.PRNGKey(0)
    k_param, k_node, k_edge, k_idx, k_face = jax.random.split(key, 5)

    # Small shapes consistent with the module (feature sizes default to 128 in the
    # original; scaled down here). Row counts are deliberately NOT multiples of 8
    # to exercise the ragged-tail masking path.
    node_input_size = 32
    edge_input_size = 32
    hidden_size = 32
    n_nodes = 50
    n_edges = 100

    node_attr = jax.random.normal(k_node, (n_nodes, node_input_size), jnp.float32)
    edge_attr = jax.random.normal(k_edge, (n_edges, edge_input_size), jnp.float32)
    edge_index = jax.random.randint(k_idx, (2, n_edges), 0, n_nodes, jnp.int32)
    face = jax.random.randint(k_face, (3, n_edges), 0, n_nodes, jnp.int32)

    encoder = EncoderPallas(k_param, node_input_size, edge_input_size, hidden_size)
    graph_out, edge_, node_ = encoder(node_attr, edge_attr, edge_index, face)
    jax.block_until_ready((graph_out["x"], graph_out["edge_attr"], edge_, node_))

    # Verify against the pure-JAX reference (bf16 output -> loosened tolerance).
    node_ref = _mlp_ln_ref(node_attr, encoder.nb_params)
    edge_ref = _mlp_ln_ref(edge_attr, encoder.eb_params)
    assert node_.shape == (n_nodes, hidden_size)
    assert edge_.shape == (n_edges, hidden_size)
    assert jnp.allclose(node_.astype(jnp.float32), node_ref, atol=3e-2, rtol=3e-2)
    assert jnp.allclose(edge_.astype(jnp.float32), edge_ref, atol=3e-2, rtol=3e-2)

    print("KERNEL_OK")
</pallas_src>

<mosaic_0001>
module attributes {stable_mosaic.version = 11 : i64} {
  func.func @_mlp_ln_kernel(%arg0: i32, %arg1: memref<56x32xf32, #tpu.memory_space<vmem>>, %arg2: memref<32x32xbf16, #tpu.memory_space<vmem>>, %arg3: memref<32x32xbf16, #tpu.memory_space<vmem>>, %arg4: memref<32x32xbf16, #tpu.memory_space<vmem>>, %arg5: memref<8x32xf32, #tpu.memory_space<vmem>>, %arg6: memref<56x32xbf16, #tpu.memory_space<vmem>>) attributes {dimension_semantics = [#tpu.dimension_semantics<parallel>], iteration_bounds = array<i64: 1>, scalar_prefetch = 0 : i64, scratch_operands = 0 : i64, tpu.core_type = #tpu.core_type<tc>, window_params = [{transform_indices = @transform_0, window_bounds = array<i64: 56, 32>}, {pipeline_mode = #tpu.pipeline_mode<synchronous>, transform_indices = @transform_1, window_bounds = array<i64: 32, 32>}, {pipeline_mode = #tpu.pipeline_mode<synchronous>, transform_indices = @transform_2, window_bounds = array<i64: 32, 32>}, {pipeline_mode = #tpu.pipeline_mode<synchronous>, transform_indices = @transform_3, window_bounds = array<i64: 32, 32>}, {pipeline_mode = #tpu.pipeline_mode<synchronous>, transform_indices = @transform_4, window_bounds = array<i64: 8, 32>}, {transform_indices = @transform_5, window_bounds = array<i64: 56, 32>}]} {
    %c0 = arith.constant 0 : index
    %c0_0 = arith.constant 0 : index
    %0 = vector.load %arg5[%c0, %c0_0] : memref<8x32xf32, #tpu.memory_space<vmem>>, vector<8x32xf32>
    %1 = vector.extract_strided_slice %0 {offsets = [0, 0], sizes = [1, 32], strides = [1, 1]} : vector<8x32xf32> to vector<1x32xf32>
    %2 = vector.extract_strided_slice %0 {offsets = [1, 0], sizes = [1, 32], strides = [1, 1]} : vector<8x32xf32> to vector<1x32xf32>
    %3 = vector.extract_strided_slice %0 {offsets = [2, 0], sizes = [1, 32], strides = [1, 1]} : vector<8x32xf32> to vector<1x32xf32>
    %4 = vector.extract_strided_slice %0 {offsets = [3, 0], sizes = [1, 32], strides = [1, 1]} : vector<8x32xf32> to vector<1x32xf32>
    %5 = vector.extract_strided_slice %0 {offsets = [4, 0], sizes = [1, 32], strides = [1, 1]} : vector<8x32xf32> to vector<1x32xf32>
    %c0_1 = arith.constant 0 : index
    %c0_2 = arith.constant 0 : index
    %6 = vector.load %arg1[%c0_1, %c0_2] : memref<56x32xf32, #tpu.memory_space<vmem>>, vector<56x32xf32>
    %7 = arith.truncf %6 : vector<56x32xf32> to vector<56x32xbf16>
    %c0_3 = arith.constant 0 : index
    %c0_4 = arith.constant 0 : index
    %8 = vector.load %arg2[%c0_3, %c0_4] : memref<32x32xbf16, #tpu.memory_space<vmem>>, vector<32x32xbf16>
    %cst = arith.constant dense<0.000000e+00> : vector<56x32xf32>
    %9 = tpu.matmul %7, %8, %cst {dimension_numbers = #tpu.dot_dimension_numbers<[1], [0], [0], [1], [0, 0, 1, 1], [], []>} : vector<56x32xbf16>, vector<32x32xbf16>, vector<56x32xf32> -> vector<56x32xf32>
    %10 = vector.broadcast %1 : vector<1x32xf32> to vector<56x32xf32>
    %11 = arith.addf %9, %10 : vector<56x32xf32>
    %12 = arith.negf %11 : vector<56x32xf32>
    %13 = math.exp %12 : vector<56x32xf32>
    %cst_5 = arith.constant 1.000000e+00 : f32
    %14 = vector.broadcast %cst_5 : f32 to vector<56x32xf32>
    %15 = arith.addf %14, %13 : vector<56x32xf32>
    %16 = arith.divf %14, %15 : vector<56x32xf32>
    %17 = arith.mulf %11, %16 : vector<56x32xf32>
    %18 = arith.truncf %17 : vector<56x32xf32> to vector<56x32xbf16>
    %c0_6 = arith.constant 0 : index
    %c0_7 = arith.constant 0 : index
    %19 = vector.load %arg3[%c0_6, %c0_7] : memref<32x32xbf16, #tpu.memory_space<vmem>>, vector<32x32xbf16>
    %cst_8 = arith.constant dense<0.000000e+00> : vector<56x32xf32>
    %20 = tpu.matmul %18, %19, %cst_8 {dimension_numbers = #tpu.dot_dimension_numbers<[1], [0], [0], [1], [0, 0, 1, 1], [], []>} : vector<56x32xbf16>, vector<32x32xbf16>, vector<56x32xf32> -> vector<56x32xf32>
    %21 = vector.broadcast %2 : vector<1x32xf32> to vector<56x32xf32>
    %22 = arith.addf %20, %21 : vector<56x32xf32>
    %23 = arith.negf %22 : vector<56x32xf32>
    %24 = math.exp %23 : vector<56x32xf32>
    %cst_9 = arith.constant 1.000000e+00 : f32
    %25 = vector.broadcast %cst_9 : f32 to vector<56x32xf32>
    %26 = arith.addf %25, %24 : vector<56x32xf32>
    %27 = arith.divf %25, %26 : vector<56x32xf32>
    %28 = arith.mulf %22, %27 : vector<56x32xf32>
    %29 = arith.truncf %28 : vector<56x32xf32> to vector<56x32xbf16>
    %c0_10 = arith.constant 0 : index
    %c0_11 = arith.constant 0 : index
    %30 = vector.load %arg4[%c0_10, %c0_11] : memref<32x32xbf16, #tpu.memory_space<vmem>>, vector<32x32xbf16>
    %cst_12 = arith.constant dense<0.000000e+00> : vector<56x32xf32>
    %31 = tpu.matmul %29, %30, %cst_12 {dimension_numbers = #tpu.dot_dimension_numbers<[1], [0], [0], [1], [0, 0, 1, 1], [], []>} : vector<56x32xbf16>, vector<32x32xbf16>, vector<56x32xf32> -> vector<56x32xf32>
    %32 = vector.broadcast %3 : vector<1x32xf32> to vector<56x32xf32>
    %33 = arith.addf %31, %32 : vector<56x32xf32>
    %cst_13 = arith.constant dense<0.000000e+00> : vector<56xf32>
    %34 = vector.multi_reduction <add>, %33, %cst_13 [1] : vector<56x32xf32> to vector<56xf32>
    %35 = vector.shape_cast %34 : vector<56xf32> to vector<56x1xf32>
    %cst_14 = arith.constant 3.200000e+01 : f32
    %36 = vector.broadcast %cst_14 : f32 to vector<56x1xf32>
    %37 = arith.divf %35, %36 : vector<56x1xf32>
    %38 = vector.broadcast %37 : vector<56x1xf32> to vector<56x32xf32>
    %39 = arith.subf %33, %38 : vector<56x32xf32>
    %40 = vector.broadcast %37 : vector<56x1xf32> to vector<56x32xf32>
    %41 = arith.subf %33, %40 : vector<56x32xf32>
    %42 = arith.mulf %39, %41 : vector<56x32xf32>
    %cst_15 = arith.constant dense<0.000000e+00> : vector<56xf32>
    %43 = vector.multi_reduction <add>, %42, %cst_15 [1] : vector<56x32xf32> to vector<56xf32>
    %44 = vector.shape_cast %43 : vector<56xf32> to vector<56x1xf32>
    %cst_16 = arith.constant 3.200000e+01 : f32
    %45 = vector.broadcast %cst_16 : f32 to vector<56x1xf32>
    %46 = arith.divf %44, %45 : vector<56x1xf32>
    %47 = vector.broadcast %37 : vector<56x1xf32> to vector<56x32xf32>
    %48 = arith.subf %33, %47 : vector<56x32xf32>
    %cst_17 = arith.constant 9.99999974E-6 : f32
    %49 = vector.broadcast %cst_17 : f32 to vector<56x1xf32>
    %50 = arith.addf %46, %49 : vector<56x1xf32>
    %51 = math.rsqrt %50 : vector<56x1xf32>
    %52 = vector.broadcast %51 : vector<56x1xf32> to vector<56x32xf32>
    %53 = arith.mulf %48, %52 : vector<56x32xf32>
    %54 = vector.broadcast %4 : vector<1x32xf32> to vector<56x32xf32>
    %55 = arith.mulf %53, %54 : vector<56x32xf32>
    %56 = vector.broadcast %5 : vector<1x32xf32> to vector<56x32xf32>
    %57 = arith.addf %55, %56 : vector<56x32xf32>
    %58 = arith.truncf %57 : vector<56x32xf32> to vector<56x32xbf16>
    %c0_18 = arith.constant 0 : index
    %c0_19 = arith.constant 0 : index
    %59 = vector.load %arg6[%c0_18, %c0_19] : memref<56x32xbf16, #tpu.memory_space<vmem>>, vector<56x32xbf16>
    tpu.vector_store %arg6[%c0_18, %c0_19], %58 {strides = array<i32>} : memref<56x32xbf16, #tpu.memory_space<vmem>>, vector<56x32xbf16>,
    return
  }
  func.func @transform_0(%arg0: i32) -> (i32, i32) {
    %c0_i32 = arith.constant 0 : i32
    %c0_i32_0 = arith.constant 0 : i32
    return %arg0, %c0_i32 : i32, i32
  }
  func.func @transform_1(%arg0: i32) -> (i32, i32) {
    %c0_i32 = arith.constant 0 : i32
    %c0_i32_0 = arith.constant 0 : i32
    %c0_i32_1 = arith.constant 0 : i32
    return %c0_i32, %c0_i32_0 : i32, i32
  }
  func.func @transform_2(%arg0: i32) -> (i32, i32) {
    %c0_i32 = arith.constant 0 : i32
    %c0_i32_0 = arith.constant 0 : i32
    %c0_i32_1 = arith.constant 0 : i32
    return %c0_i32, %c0_i32_0 : i32, i32
  }
  func.func @transform_3(%arg0: i32) -> (i32, i32) {
    %c0_i32 = arith.constant 0 : i32
    %c0_i32_0 = arith.constant 0 : i32
    %c0_i32_1 = arith.constant 0 : i32
    return %c0_i32, %c0_i32_0 : i32, i32
  }
  func.func @transform_4(%arg0: i32) -> (i32, i32) {
    %c0_i32 = arith.constant 0 : i32
    %c0_i32_0 = arith.constant 0 : i32
    %c0_i32_1 = arith.constant 0 : i32
    return %c0_i32, %c0_i32_0 : i32, i32
  }
  func.func @transform_5(%arg0: i32) -> (i32, i32) {
    %c0_i32 = arith.constant 0 : i32
    %c0_i32_0 = arith.constant 0 : i32
    return %arg0, %c0_i32 : i32, i32
  }
}

</mosaic_0001>

<bundles_post_ra>
// kernel: tpu_custom_call.1
= control target key start
LH: loop header
LB: loop body
LE: loop exit
PB: predicated region body
PF: predicated region fallthrough
CT: control target
= control target key end

     0   :  { %vm53_vm0 = vcmask 261120   ;;  %v37_v15 = vlaneseq  ;;  %vm571_vm1 = vcmask 257024   ;;  %s942_s1 = inlined_call_operand.vmem [shape: bf16[32,32], index: 1, kind: input, shape index: {}]   ;;  %s943_s0 = inlined_call_operand.vmem [shape: f32[50,32], index: 0, kind: input, shape index: {}]   ;;  %s944_s2 = inlined_call_operand.vmem [shape: bf16[32,32], index: 2, kind: input, shape index: {}]   ;;  %s945_s4 = inlined_call_operand.vmem [shape: f32[8,32], index: 4, kind: input, shape index: {}]   ;;  %s946_s3 = inlined_call_operand.vmem [shape: bf16[32,32], index: 3, kind: input, shape index: {}]   ;;  %s947_s5 = inlined_call_operand.vmem [shape: bf16[50,32], index: 5, kind: output, shape index: {}]  }
   0x1   :  { %v687_v0 = vld [vmem:[%s942_s1] sm:$0xff]   ;;  %v688_v1 = vld [vmem:[%s942_s1 + $0x8] sm:$0xff]   ;;  %v24_v7 = vld [vmem:[%s943_s0 + $0x10] sm:$0xff] }
   0x2   :  { %647 = vmatprep.subr.bf16.mxu0 %v687_v0  ;;  %683 = vmatprep.subr.bf16.mxu1 %v687_v0  ;;  %v22_v2 = vld [vmem:[%s943_s0] sm:$0xff]  ;;  %v23_v3 = vld [vmem:[%s943_s0 + $0x8] sm:$0xff]  ;;  %v25_v8 = vld [vmem:[%s943_s0 + $0x18] sm:$0xff]  ;;  %v830_v16 = vshrl.u32 %v37_v15, 7 }
   0x3   :  { %v26_v4 = vld [vmem:[%s943_s0 + $0x20] sm:$0xff]  ;;  %648 = vmatpush3.bf16.msra.mxu0 %v687_v0  ;;  %685 = vmatpush3.bf16.msra.mxu1 %v687_v0  ;;  %v29_v5 = vpack.c.bf16 %v23_v3, %v22_v2  ;;  %v27_v6 = vld [vmem:[%s943_s0 + $0x28] sm:$0xff]  ;;  %v28_v10 = vld [vmem:[%s943_s0 + $0x30] sm:$0xff]  ;;  %v30_v11 = vpack.c.bf16 %v25_v8, %v24_v7 }
   0x4   :  { %649 = vmatprep.subr.bf16.mxu0 %v688_v1  ;;  %684 = vmatprep.subr.bf16.mxu1 %v688_v1  ;;  %v31_v9 = vpack.c.bf16 %v27_v6, %v26_v4  ;;  %v32_v12 = vpack.c.bf16 %v28_v10, %v28_v10  ;;  %v689_v13 = vld [vmem:[%s944_s2] sm:$0xff]   ;;  %v690_v14 = vld [vmem:[%s944_s2 + $0x8] sm:$0xff]   ;;  %v39_v17 = vsub.s32 0, %v830_v16 }
   0x5   :  { %651 = vmatprep.mubr.msk.bf16.mxu0 %vm53_vm0, %v29_v5  ;;  %v836_v18 = vld [vmem:[%s945_s4] sm:$0xff] }
   0x6   :  { %655 = vmatprep.mubr.msk.bf16.mxu1 %vm53_vm0, %v31_v9  ;;  %v40_v19 = vrot.slane %v836_v18, %v39_v17  ;;  %v691_v10 = vld [vmem:[%s946_s3] sm:$0xff]  }
   0x7   :  { %650 = vmatpush3.bf16.msra.mxu0 %v688_v1  ;;  %686 = vmatpush3.bf16.msra.mxu1 %v688_v1 }
   0x8   :  { %659 = vmatprep.subr.bf16.mxu1 %v689_v13  ;;  %671 = vmatprep.subr.bf16.mxu0 %v691_v10 }
   0xa   :  { %652 = vmatmul.mubr.msk.bf16.vlgmr.msra.gmra.mrb[0].mxu0 %vm53_vm0, %v30_v11  ;;  %656 = vmatmul.mubr.msk.bf16.vlgmr.msra.gmra.mrb[0].mxu1 %vm53_vm0, %v32_v12  ;;  %v692_v11 = vld [vmem:[%s946_s3 + $0x8] sm:$0xff]   ;;  %v189_v12 = vsub.s32 1, %v830_v16 }
   0xb   :  { %660 = vmatpush3.bf16.msra.mxu1 %v689_v13  ;;  %672 = vmatpush3.bf16.msra.mxu0 %v691_v10 }
   0xc   :  { %661 = vmatprep.subr.bf16.mxu1 %v690_v14  ;;  %673 = vmatprep.subr.bf16.mxu0 %v692_v11  ;;  %v190_v13 = vrot.slane %v836_v18, %v189_v12 }
   0xf   :  { %662 = vmatpush3.bf16.msra.mxu1 %v690_v14  ;;  %674 = vmatpush3.bf16.msra.mxu0 %v692_v11 }
  0xdd   :  { %v653_v20 = vpop.f32.mrb[0].mxu0  ;;  %v657_v21 = vpop.f32.mrb[0].mxu1 }
  0xde   :  { %v109_v22 = vadd.f32 %v653_v20, %v40_v19  ;;  %v839_v23 = vadd.f32 %v657_v21, %v40_v19  ;;  %v100_v24 = vpop.f32.mrb[1].mxu0  ;;  %v116_v25 = vpop.f32.mrb[1].mxu1 }
  0xdf   :  { %v101_v26 = vadd.f32 %v100_v24, %v40_v19  ;;  %v117_v27 = vadd.f32 %v116_v25, %v40_v19  ;;  %v654_v28 = vpop.f32.mrb[2].mxu0  ;;  %v658_v29 = vpop.f32.mrb[2].mxu1 }
  0xe0   :  { %v591_v30 = vmul.f32 -1.442695, %v109_v22  ;;  %v595_v31 = vmul.f32 -1.442695, %v839_v23  ;;  %v112_v32 = vadd.f32 %v654_v28, %v40_v19  ;;  %v103_v33 = vpop.f32.mrb[3].mxu0  ;;  %v119_v34 = vpop.f32.mrb[3].mxu1 }
  0xe1   :  { %v589_v35 = vmul.f32 -1.442695, %v101_v26  ;;  %v593_v36 = vmul.f32 -1.442695, %v117_v27  ;;  %v104_v37 = vadd.f32 %v103_v33, %v40_v19  ;;  %v120_v38 = vadd.f32 %v119_v34, %v40_v19 }
  0xe2   :  { %693 = vpow2.f32 %v591_v30  ;;  %v592_v39 = vmul.f32 -1.442695, %v112_v32 }
  0xe3   :  { %695 = vpow2.f32 %v595_v31  ;;  %v590_v40 = vmul.f32 -1.442695, %v104_v37  ;;  %v594_v41 = vmul.f32 -1.442695, %v120_v38 }
  0xe4   :  { %697 = vpow2.f32 %v589_v35 }
  0xe5   :  { %699 = vpow2.f32 %v593_v36 }
  0xe6   :  { %701 = vpow2.f32 %v592_v39 }
  0xe7   :  { %703 = vpow2.f32 %v590_v40 }
  0xe8   :  { %705 = vpow2.f32 %v594_v41 }
  0xec   :  { %v694_v42 = vpop.eup %693 }
  0xed   :  { %v696_v43 = vpop.eup %695  ;;  %v153_v44 = vadd.f32 1.0, %v694_v42 }
  0xee   :  { %v698_v45 = vpop.eup %697  ;;  %v157_v55 = vadd.f32 1.0, %v696_v43 }
  0xef   :  { %v700_v46 = vpop.eup %699  ;;  %v151_v47 = vadd.f32 1.0, %v698_v45  ;;  %707 = vrcp.f32 %v153_v44 }
  0xf0   :  { %v702_v48 = vpop.eup %701  ;;  %v155_v49 = vadd.f32 1.0, %v700_v46 }
  0xf1   :  { %v704_v50 = vpop.eup %703  ;;  %709 = vrcp.f32 %v151_v47  ;;  %v154_v51 = vadd.f32 1.0, %v702_v48 }
  0xf2   :  { %v706_v52 = vpop.eup %705  ;;  %711 = vrcp.f32 %v155_v49  ;;  %v152_v53 = vadd.f32 1.0, %v704_v50 }
  0xf3   :  { %713 = vrcp.f32 %v154_v51  ;;  %v156_v54 = vadd.f32 1.0, %v706_v52 }
  0xf4   :  { %715 = vrcp.f32 %v152_v53 }
  0xf5   :  { %717 = vrcp.f32 %v156_v54 }
  0xf6   :  { %719 = vrcp.f32 %v157_v55 }
  0xf9   :  { %v708_v56 = vpop.eup %707 }
  0xfa   :  { %v174_v61 = vmul.f32 %v708_v56, %v109_v22 }
  0xfb   :  { %v710_v57 = vpop.eup %709 }
  0xfc   :  { %v712_v58 = vpop.eup %711  ;;  %v172_v0 = vmul.f32 %v710_v57, %v101_v26 }
  0xfd   :  { %v714_v59 = vpop.eup %713  ;;  %v176_v2 = vmul.f32 %v712_v58, %v117_v27 }
  0xfe   :  { %v716_v60 = vpop.eup %715  ;;  %v175_v62 = vmul.f32 %v714_v59, %v112_v32 }
  0xff   :  { %v718_v63 = vpop.eup %717  ;;  %v173_v1 = vmul.f32 %v716_v60, %v104_v37 }
 0x100   :  { %v180_v3 = vpack.c.bf16 %v175_v62, %v174_v61  ;;  %v177_v4 = vmul.f32 %v718_v63, %v120_v38  ;;  %v720_v7 = vpop.eup %719 }
 0x101   :  { %v179_v5 = vpack.c.bf16 %v173_v1, %v172_v0  ;;  %v178_v8 = vmul.f32 %v720_v7, %v839_v23 }
 0x102   :  { %v181_v6 = vpack.c.bf16 %v177_v4, %v176_v2 }
 0x103   :  { %663 = vmatprep.mubr.msk.bf16.mxu1 %vm53_vm0, %v179_v5  ;;  %v182_v9 = vpack.c.bf16 %v178_v8, %v178_v8 }
 0x104   :  { %664 = vmatmul.mubr.msk.bf16.vlgmr.msra.gmra.mrb[4].mxu1 %vm53_vm0, %v180_v3 }
 0x105   :  { %667 = vmatprep.mubr.msk.bf16.mxu1 %vm53_vm0, %v181_v6  ;;  %v338_v6 = vsub.s32 2, %v830_v16 }
 0x107   :  { %v339_v7 = vrot.slane %v836_v18, %v338_v6 }
 0x10c   :  { %668 = vmatmul.mubr.msk.bf16.gmra.mrb[8].mxu1 %vm53_vm0, %v182_v9 }
 0x1d7   :  { %v665_v14 = vpop.f32.mrb[4].mxu1 }
 0x1d8   :  { %v258_v15 = vadd.f32 %v665_v14, %v190_v13  ;;  %v249_v17 = vpop.f32.mrb[5].mxu1 }
 0x1d9   :  { %v250_v19 = vadd.f32 %v249_v17, %v190_v13  ;;  %v666_v20 = vpop.f32.mrb[6].mxu1 }
 0x1da   :  { %v604_v21 = vmul.f32 -1.442695, %v258_v15  ;;  %v261_v22 = vadd.f32 %v666_v20, %v190_v13  ;;  %v252_v23 = vpop.f32.mrb[7].mxu1 }
 0x1db   :  { %v602_v24 = vmul.f32 -1.442695, %v250_v19  ;;  %v253_v25 = vadd.f32 %v252_v23, %v190_v13 }
 0x1dc   :  { %721 = vpow2.f32 %v604_v21  ;;  %v605_v26 = vmul.f32 -1.442695, %v261_v22 }
 0x1dd   :  { %723 = vpow2.f32 %v602_v24  ;;  %v603_v27 = vmul.f32 -1.442695, %v253_v25 }
 0x1de   :  { %725 = vpow2.f32 %v605_v26 }
 0x1df   :  { %727 = vpow2.f32 %v603_v27  ;;  %v669_v28 = vpop.f32.mrb[8].mxu1 }
 0x1e0   :  { %v274_v29 = vadd.f32 %v669_v28, %v190_v13  ;;  %v265_v30 = vpop.f32.mrb[9].mxu1 }
 0x1e1   :  { %v266_v31 = vadd.f32 %v265_v30, %v190_v13  ;;  %v670_v32 = vpop.f32.mrb[10].mxu1 }
 0x1e2   :  { %v608_v33 = vmul.f32 -1.442695, %v274_v29  ;;  %v268_v34 = vpop.f32.mrb[11].mxu1 }
 0x1e3   :  { %v606_v35 = vmul.f32 -1.442695, %v266_v31  ;;  %v269_v36 = vadd.f32 %v268_v34, %v190_v13 }
 0x1e4   :  { %729 = vpow2.f32 %v608_v33 }
 0x1e5   :  { %731 = vpow2.f32 %v606_v35  ;;  %v607_v37 = vmul.f32 -1.442695, %v269_v36 }
 0x1e6   :  { %v722_v38 = vpop.eup %721 }
 0x1e7   :  { %v724_v39 = vpop.eup %723  ;;  %v302_v40 = vadd.f32 1.0, %v722_v38  ;;  %733 = vpow2.f32 %v607_v37 }
 0x1e8   :  { %v726_v41 = vpop.eup %725  ;;  %v300_v42 = vadd.f32 1.0, %v724_v39 }
 0x1e9   :  { %v728_v43 = vpop.eup %727  ;;  %735 = vrcp.f32 %v302_v40  ;;  %v303_v44 = vadd.f32 1.0, %v726_v41 }
 0x1ea   :  { %737 = vrcp.f32 %v300_v42  ;;  %v301_v45 = vadd.f32 1.0, %v728_v43 }
 0x1eb   :  { %739 = vrcp.f32 %v303_v44 }
 0x1ec   :  { %741 = vrcp.f32 %v301_v45 }
 0x1ee   :  { %v730_v46 = vpop.eup %729 }
 0x1ef   :  { %v732_v47 = vpop.eup %731  ;;  %v306_v48 = vadd.f32 1.0, %v730_v46 }
 0x1f0   :  { %v304_v49 = vadd.f32 1.0, %v732_v47 }
 0x1f1   :  { %v734_v50 = vpop.eup %733  ;;  %743 = vrcp.f32 %v306_v48 }
 0x1f2   :  { %745 = vrcp.f32 %v304_v49  ;;  %v305_v51 = vadd.f32 1.0, %v734_v50 }
 0x1f3   :  { %v736_v52 = vpop.eup %735 }
 0x1f4   :  { %v738_v53 = vpop.eup %737  ;;  %747 = vrcp.f32 %v305_v51  ;;  %v323_v56 = vmul.f32 %v736_v52, %v258_v15 }
 0x1f5   :  { %v740_v54 = vpop.eup %739  ;;  %v321_v58 = vmul.f32 %v738_v53, %v250_v19 }
 0x1f6   :  { %v742_v55 = vpop.eup %741  ;;  %v324_v57 = vmul.f32 %v740_v54, %v261_v22 }
 0x1f7   :  { %v322_v59 = vmul.f32 %v742_v55, %v253_v25 }
 0x1f8   :  { %v329_v60 = vpack.c.bf16 %v324_v57, %v323_v56 }
 0x1f9   :  { %v328_v61 = vpack.c.bf16 %v322_v59, %v321_v58 }
 0x1fb   :  { %v744_v62 = vpop.eup %743  ;;  %675 = vmatprep.mubr.msk.bf16.mxu0 %vm53_vm0, %v328_v61 }
 0x1fc   :  { %v746_v63 = vpop.eup %745  ;;  %676 = vmatmul.mubr.msk.bf16.vlgmr.msra.gmra.mrb[4].mxu0 %vm53_vm0, %v329_v60  ;;  %v327_v1 = vmul.f32 %v744_v62, %v274_v29 }
 0x1fd   :  { %v325_v2 = vmul.f32 %v746_v63, %v266_v31 }
 0x1fe   :  { %v748_v0 = vpop.eup %747  ;;  %v331_v5 = vpack.c.bf16 %v327_v1, %v327_v1 }
 0x1ff   :  { %v326_v3 = vmul.f32 %v748_v0, %v269_v36 }
 0x201   :  { %v330_v4 = vpack.c.bf16 %v326_v3, %v325_v2 }
 0x203   :  { %679 = vmatprep.mubr.msk.bf16.mxu0 %vm53_vm0, %v330_v4 }
 0x204   :  { %680 = vmatmul.mubr.msk.bf16.gmra.mrb[8].mxu0 %vm53_vm0, %v331_v5 }
 0x2cf   :  { %v677_v8 = vpop.f32.mrb[4].mxu0 }
 0x2d0   :  { %v407_v9 = vadd.f32 %v677_v8, %v339_v7  ;;  %v398_v10 = vpop.f32.mrb[5].mxu0 }
 0x2d1   :  { %v399_v11 = vadd.f32 %v398_v10, %v339_v7  ;;  %v678_v12 = vpop.f32.mrb[6].mxu0 }
 0x2d2   :  { %v410_v13 = vadd.f32 %v678_v12, %v339_v7  ;;  %v401_v14 = vpop.f32.mrb[7].mxu0  ;;  %v434_v15 = vsel %vm53_vm0, %v407_v9, 0.0 }
 0x2d3   :  { %v402_v17 = vadd.f32 %v401_v14, %v339_v7  ;;  %435 = vadd.xlane.f32.xlu1 %v434_v15  ;;  %v428_v19 = vsel %vm53_vm0, %v399_v11, 0.0  ;;  %v522_v15 = vsub.s32 3, %v830_v16 }
 0x2d4   :  { %429 = vadd.xlane.f32.xlu0 %v428_v19  ;;  %v437_v20 = vsel %vm53_vm0, %v410_v13, 0.0 }
 0x2d5   :  { %v431_v22 = vsel %vm53_vm0, %v402_v17, 0.0 }
 0x2d7   :  { %438 = vadd.xlane.f32.xlu1 %v437_v20  ;;  %v681_v21 = vpop.f32.mrb[8].mxu0  ;;  %v533_v20 = vsub.s32 4, %v830_v16 }
 0x2d8   :  { %v414_v23 = vpop.f32.mrb[9].mxu0  ;;  %432 = vadd.xlane.f32.xlu0 %v431_v22  ;;  %v423_v27 = vadd.f32 %v681_v21, %v339_v7 }
 0x2d9   :  { %v415_v24 = vadd.f32 %v414_v23, %v339_v7  ;;  %v682_v25 = vpop.f32.mrb[10].mxu0 }
 0x2da   :  { %v417_v26 = vpop.f32.mrb[11].mxu0  ;;  %v446_v31 = vsel %vm53_vm0, %v423_v27, 0.0  ;;  %v523_v25 = vrot.slane %v836_v18, %v522_v15 }
 0x2db   :  { %v418_v28 = vadd.f32 %v417_v26, %v339_v7  ;;  %v440_v29 = vsel %vm53_vm0, %v415_v24, 0.0 }
 0x2dc   :  { %441 = vadd.xlane.f32.xlu0 %v440_v29  ;;  %v534_v29 = vrot.slane %v836_v18, %v533_v20 }
 0x2dd   :  { %v443_v30 = vsel %vm53_vm0, %v418_v28, 0.0 }
 0x2de   :  { %444 = vadd.xlane.f32.xlu1 %v443_v30 }
 0x2e0   :  { %447 = vadd.xlane.f32.xlu0 %v446_v31 }
 0x360   :  { %v436_v32 = vpop.xlane.xlu1 %435 }
 0x361   :  { %v452_v33 = vmul.f32 0.03125, %v436_v32  ;;  %v430_v34 = vpop.xlane.xlu0 %429 }
 0x362   :  { %v450_v35 = vmul.f32 0.03125, %v430_v34 }
 0x363   :  { %v868_v36 = vsub.f32 %v407_v9, %v452_v33 }
 0x364   :  { %v870_v37 = vsub.f32 %v399_v11, %v450_v35  ;;  %v439_v38 = vpop.xlane.xlu1 %438 }
 0x365   :  { %v453_v39 = vmul.f32 0.03125, %v439_v38  ;;  %v433_v40 = vpop.xlane.xlu0 %432  ;;  %v466_v41 = vmul.f32 %v868_v36, %v868_v36 }
 0x366   :  { %v451_v42 = vmul.f32 0.03125, %v433_v40  ;;  %v464_v45 = vmul.f32 %v870_v37, %v870_v37 }
 0x367   :  { %v874_v43 = vsub.f32 %v410_v13, %v453_v39  ;;  %v477_v44 = vsel %vm53_vm0, %v466_v41, 0.0 }
 0x368   :  { %v879_v46 = vsub.f32 %v402_v17, %v451_v42  ;;  %478 = vadd.xlane.f32.xlu1 %v477_v44  ;;  %v471_v52 = vsel %vm53_vm0, %v464_v45, 0.0 }
 0x369   :  { %v442_v47 = vpop.xlane.xlu0 %441  ;;  %v467_v48 = vmul.f32 %v874_v43, %v874_v43 }
 0x36a   :  { %v454_v49 = vmul.f32 0.03125, %v442_v47  ;;  %v465_v53 = vmul.f32 %v879_v46, %v879_v46 }
 0x36b   :  { %v445_v50 = vpop.xlane.xlu1 %444  ;;  %v480_v51 = vsel %vm53_vm0, %v467_v48, 0.0 }
 0x36c   :  { %v887_v54 = vsub.f32 %v415_v24, %v454_v49  ;;  %v455_v55 = vmul.f32 0.03125, %v445_v50  ;;  %481 = vadd.xlane.f32.xlu0 %v480_v51  ;;  %472 = vadd.xlane.f32.xlu1 %v471_v52  ;;  %v474_v60 = vsel %vm53_vm0, %v465_v53, 0.0 }
 0x36d   :  { %v448_v56 = vpop.xlane.xlu0 %447 }
 0x36e   :  { %v889_v57 = vsub.f32 %v418_v28, %v455_v55  ;;  %v456_v58 = vmul.f32 0.03125, %v448_v56  ;;  %v468_v59 = vmul.f32 %v887_v54, %v887_v54 }
 0x370   :  { %v894_v61 = vsub.f32 %v423_v27, %v456_v58  ;;  %475 = vadd.xlane.f32.xlu0 %v474_v60  ;;  %v483_v62 = vsel %vm53_vm0, %v468_v59, 0.0  ;;  %v469_v63 = vmul.f32 %v889_v57, %v889_v57 }
 0x371   :  { %484 = vadd.xlane.f32.xlu1 %v483_v62 }
 0x372   :  { %v486_v0 = vsel %vm53_vm0, %v469_v63, 0.0  ;;  %v470_v1 = vmul.f32 %v894_v61, %v894_v61 }
 0x374   :  { %487 = vadd.xlane.f32.xlu0 %v486_v0  ;;  %v489_v2 = vsel %vm53_vm0, %v470_v1, 0.0 }
 0x375   :  { %490 = vadd.xlane.f32.xlu1 %v489_v2 }
 0x3f5   :  { %v479_v3 = vpop.xlane.xlu1 %478 }
 0x3f6   :  { %v494_v4 = vmul.f32 0.03125, %v479_v3 }
 0x3f8   :  { %v501_v5 = vadd.f32 1e-05, %v494_v4 }
 0x3f9   :  { %v473_v6 = vpop.xlane.xlu1 %472  ;;  %v482_v7 = vpop.xlane.xlu0 %481 }
 0x3fa   :  { %749 = vrsqrt.f32 %v501_v5  ;;  %v492_v8 = vmul.f32 0.03125, %v473_v6  ;;  %v495_v9 = vmul.f32 0.03125, %v482_v7 }
 0x3fc   :  { %v499_v10 = vadd.f32 1e-05, %v492_v8  ;;  %v502_v11 = vadd.f32 1e-05, %v495_v9 }
 0x3fd   :  { %v476_v12 = vpop.xlane.xlu0 %475 }
 0x3fe   :  { %751 = vrsqrt.f32 %v499_v10  ;;  %v493_v13 = vmul.f32 0.03125, %v476_v12  ;;  %v485_v14 = vpop.xlane.xlu1 %484 }
 0x3ff   :  { %753 = vrsqrt.f32 %v502_v11  ;;  %v496_v17 = vmul.f32 0.03125, %v485_v14 }
 0x400   :  { %v500_v19 = vadd.f32 1e-05, %v493_v13 }
 0x401   :  { %v503_v21 = vadd.f32 1e-05, %v496_v17  ;;  %v488_v22 = vpop.xlane.xlu0 %487 }
 0x402   :  { %755 = vrsqrt.f32 %v500_v19  ;;  %v497_v23 = vmul.f32 0.03125, %v488_v22  ;;  %v491_v24 = vpop.xlane.xlu1 %490 }
 0x403   :  { %757 = vrsqrt.f32 %v503_v21  ;;  %v498_v26 = vmul.f32 0.03125, %v491_v24 }
 0x404   :  { %v750_v27 = vpop.eup %749  ;;  %v504_v28 = vadd.f32 1e-05, %v497_v23 }
 0x405   :  { %v515_v30 = vmul.f32 %v750_v27, %v868_v36  ;;  %v505_v31 = vadd.f32 1e-05, %v498_v26 }
 0x406   :  { %759 = vrsqrt.f32 %v504_v28 }
 0x407   :  { %v526_v32 = vmul.f32 %v523_v25, %v515_v30  ;;  %761 = vrsqrt.f32 %v505_v31 }
 0x408   :  { %v752_v16 = vpop.eup %751 }
 0x409   :  { %v754_v33 = vpop.eup %753  ;;  %v537_v34 = vadd.f32 %v534_v29, %v526_v32  ;;  %v513_v35 = vmul.f32 %v752_v16, %v870_v37 }
 0x40a   :  { %v516_v38 = vmul.f32 %v754_v33, %v874_v43 }
 0x40b   :  { %v624_v39 = vpack.c.bf16 %v537_v34, %v537_v34  ;;  %v524_v40 = vmul.f32 %v523_v25, %v513_v35 }
 0x40c   :  { %v756_v41 = vpop.eup %755  ;;  %v527_v42 = vmul.f32 %v523_v25, %v516_v38 }
 0x40d   :  { %v758_v44 = vpop.eup %757  ;;  %574 = vst.msk [vmem:[%s947_s5 + $0x8] sm:$0xf] %vm571_vm1, %v624_v39  ;;  %v535_v18 = vadd.f32 %v534_v29, %v524_v40  ;;  %v514_v36 = vmul.f32 %v756_v41, %v879_v46 }
 0x40e   :  { %v538_v45 = vadd.f32 %v534_v29, %v527_v42  ;;  %v517_v47 = vmul.f32 %v758_v44, %v887_v54 }
 0x40f   :  { %v622_v37 = vpack.c.bf16 %v535_v18, %v535_v18  ;;  %v525_v48 = vmul.f32 %v523_v25, %v514_v36 }
 0x410   :  { %v760_v49 = vpop.eup %759  ;;  %v625_v43 = vpack.c.bf16 %v538_v45, %v538_v45  ;;  %v528_v50 = vmul.f32 %v523_v25, %v517_v47 }
 0x411   :  { %v762_v51 = vpop.eup %761  ;;  %572 = vst.msk [vmem:[%s947_s5] sm:$0xf] %vm571_vm1, %v622_v37  ;;  %v536_v52 = vadd.f32 %v534_v29, %v525_v48  ;;  %v518_v53 = vmul.f32 %v760_v49, %v889_v57 }
 0x412   :  { %575 = vst.msk [vmem:[%s947_s5 + $0xc] sm:$0xf] %vm571_vm1, %v625_v43  ;;  %v539_v46 = vadd.f32 %v534_v29, %v528_v50  ;;  %v519_v54 = vmul.f32 %v762_v51, %v894_v61 }
 0x413   :  { %v623_v55 = vpack.c.bf16 %v536_v52, %v536_v52  ;;  %v529_v56 = vmul.f32 %v523_v25, %v518_v53 }
 0x414   :  { %v626_v58 = vpack.c.bf16 %v539_v46, %v539_v46  ;;  %v530_v59 = vmul.f32 %v523_v25, %v519_v54 }
 0x415   :  { %573 = vst.msk [vmem:[%s947_s5 + $0x4] sm:$0xf] %vm571_vm1, %v623_v55  ;;  %v540_v60 = vadd.f32 %v534_v29, %v529_v56 }
 0x416   :  { %576 = vst.msk [vmem:[%s947_s5 + $0x10] sm:$0xf] %vm571_vm1, %v626_v58  ;;  %v541_v57 = vadd.f32 %v534_v29, %v530_v59 }
 0x417   :  { %v627_v62 = vpack.c.bf16 %v540_v60, %v540_v60 }
 0x418   :  { %v628_v63 = vpack.c.bf16 %v541_v57, %v541_v57 }
 0x419   :  { %577 = vst.msk [vmem:[%s947_s5 + $0x14] sm:$0xf] %vm571_vm1, %v627_v62 }
 0x41a   :  { %578 = vst.msk [vmem:[%s947_s5 + $0x18] sm:$0xf] %vm571_vm1, %v628_v63 }

</bundles_post_ra>
